<compile_context>
chip_gen: v7x
topology: tpu7x:2x2x1
jax: 0.10.0
libtpu: 0.0.40
codegen_flags: <defaults>
</compile_context>

<pallas_src>
import jax
import jax.numpy as jnp
from jax.experimental import pallas as pl
from jax.experimental.pallas import tpu as pltpu

DROP_P = 0.5


def decoder_kernel(x_ref, mask_ref, w1t_ref, w2t_ref, bias_ref, o_ref):
    x = x_ref[...].astype(jnp.float32)                        # (TM, F)
    b = bias_ref[...]                                         # (2, F): [b1; b2]

    # --- Linear 1 (weights already transposed -> straight MXU matmul)
    h = jnp.dot(x, w1t_ref[...], preferred_element_type=jnp.float32) + b[0:1, :]

    # --- Dropout(0.5), training mode: mask holds 0.0 or 1/(1-p) = 2.0 (bf16)
    h = h * mask_ref[...].astype(jnp.float32)

    # --- Tanhshrink: x - tanh(x)   (tanh -> EUP slot)
    h = h - jnp.tanh(h)

    # --- Linear 2
    out = jnp.dot(h, w2t_ref[...], preferred_element_type=jnp.float32) + b[1:2, :]
    o_ref[...] = out.astype(o_ref.dtype)


def _pick_batch_tile(n):
    """Largest of (512, 256, 128) whose padding waste is <= ~12.5%, else 128/8-aligned."""
    if n < 128:
        return max(8, -(-n // 8) * 8)
    for tm in (512, 256, 128):
        pad = (-(-n // tm)) * tm - n
        if n >= tm and pad * 8 <= n:
            return tm
    return 128


def decoder_forward(x, w1, b1, w2, b2, mask):
    """x: (N, F); w1, w2: PyTorch layout (out, in); b1, b2: (F,); mask: (N, F)."""
    N, F = x.shape

    TM = _pick_batch_tile(N)
    Np = -(-N // TM) * TM
    if Np != N:
        pad = ((0, Np - N), (0, 0))
        x = jnp.pad(x, pad)
        mask = jnp.pad(mask, pad)

    w1t = w1.T                                                # (in, out)
    w2t = w2.T
    bias = jnp.stack([b1, b2], axis=0).astype(jnp.float32)    # (2, F)
    mask_bf16 = mask.astype(jnp.bfloat16)                     # exact for {0.0, 2.0}

    out = pl.pallas_call(
        decoder_kernel,
        out_shape=jax.ShapeDtypeStruct((Np, F), x.dtype),
        grid=(Np // TM,),
        in_specs=[
            pl.BlockSpec((TM, F), lambda i: (i, 0)),          # x tile (pipelined)
            pl.BlockSpec((TM, F), lambda i: (i, 0)),          # dropout mask tile (bf16)
            pl.BlockSpec((F, F), lambda i: (0, 0)),           # W1^T (VMEM-resident)
            pl.BlockSpec((F, F), lambda i: (0, 0)),           # W2^T (VMEM-resident)
            pl.BlockSpec((2, F), lambda i: (0, 0)),           # [b1; b2]
        ],
        out_specs=pl.BlockSpec((TM, F), lambda i: (i, 0)),
        compiler_params=pltpu.CompilerParams(
            dimension_semantics=("parallel",),
            vmem_limit_bytes=64 << 20),
    )(x, mask_bf16, w1t, w2t, bias)
    return out[:N]


def orthogonal(key, n, dtype=jnp.float32):
    """Deterministic orthogonal matrix (mirrors nn.init.orthogonal_ semantics)."""
    a = jax.random.normal(key, (n, n), dtype=jnp.float32)
    q, r = jnp.linalg.qr(a)
    q = q * jnp.sign(jnp.diagonal(r))[None, :]                # unique decomposition
    return q.astype(dtype)


def make_params(key, num_inputs):
    k1, k2 = jax.random.split(key)
    w1 = orthogonal(k1, num_inputs)                           # Linear: orthogonal
    b1 = jnp.zeros((num_inputs,), jnp.float32)                # bias = 0
    w2 = orthogonal(k2, num_inputs)
    b2 = jnp.zeros((num_inputs,), jnp.float32)
    return w1, b1, w2, b2


if __name__ == "__main__":
    N = 256          # batch: single 256-row tile under the adaptive tiler
    F = 128          # num_inputs (feature / lane axis)

    key = jax.random.PRNGKey(0)
    kx, kp, kd = jax.random.split(key, 3)
    x = jax.random.normal(kx, (N, F), dtype=jnp.float32)
    w1, b1, w2, b2 = make_params(kp, F)

    # Dropout(0.5) keep-mask, pre-scaled by 1/(1-p) = 2.
    # TODO(synk): mask is distributionally equivalent to torch Dropout, not
    # bit-identical to PyTorch's RNG stream.
    keep = jax.random.bernoulli(kd, p=1.0 - DROP_P, shape=(N, F))
    mask = keep.astype(jnp.float32) * (1.0 / (1.0 - DROP_P))

    out = decoder_forward(x, w1, b1, w2, b2, mask)
    out = jax.block_until_ready(out)

    # Pure-JAX reference (same weights / same mask).
    h = x @ w1.T + b1
    h = h * mask
    h = h - jnp.tanh(h)
    ref = h @ w2.T + b2

    assert out.shape == (N, F) and out.dtype == jnp.float32
    assert bool(jnp.isfinite(out).all())
    assert bool(jnp.allclose(out, ref, rtol=1e-3, atol=1e-2))
    print("KERNEL_OK")
</pallas_src>

<mosaic_0001>
module attributes {stable_mosaic.version = 11 : i64} {
  func.func @decoder_kernel(%arg0: i32, %arg1: memref<256x128xf32, #tpu.memory_space<vmem>>, %arg2: memref<256x128xbf16, #tpu.memory_space<vmem>>, %arg3: memref<128x128xf32, #tpu.memory_space<vmem>>, %arg4: memref<128x128xf32, #tpu.memory_space<vmem>>, %arg5: memref<2x128xf32, #tpu.memory_space<vmem>>, %arg6: memref<256x128xf32, #tpu.memory_space<vmem>>) attributes {dimension_semantics = [#tpu.dimension_semantics<parallel>], iteration_bounds = array<i64: 1>, scalar_prefetch = 0 : i64, scratch_operands = 0 : i64, tpu.core_type = #tpu.core_type<tc>, window_params = [{transform_indices = @transform_0, window_bounds = array<i64: 256, 128>}, {transform_indices = @transform_1, window_bounds = array<i64: 256, 128>}, {pipeline_mode = #tpu.pipeline_mode<synchronous>, transform_indices = @transform_2, window_bounds = array<i64: 128, 128>}, {pipeline_mode = #tpu.pipeline_mode<synchronous>, transform_indices = @transform_3, window_bounds = array<i64: 128, 128>}, {pipeline_mode = #tpu.pipeline_mode<synchronous>, transform_indices = @transform_4, window_bounds = array<i64: 2, 128>}, {transform_indices = @transform_5, window_bounds = array<i64: 256, 128>}]} {
    %c0 = arith.constant 0 : index
    %c0_0 = arith.constant 0 : index
    %0 = vector.load %arg1[%c0, %c0_0] : memref<256x128xf32, #tpu.memory_space<vmem>>, vector<256x128xf32>
    %c0_1 = arith.constant 0 : index
    %c0_2 = arith.constant 0 : index
    %1 = vector.load %arg5[%c0_1, %c0_2] : memref<2x128xf32, #tpu.memory_space<vmem>>, vector<2x128xf32>
    %c0_3 = arith.constant 0 : index
    %c0_4 = arith.constant 0 : index
    %2 = vector.load %arg3[%c0_3, %c0_4] : memref<128x128xf32, #tpu.memory_space<vmem>>, vector<128x128xf32>
    %cst = arith.constant dense<0.000000e+00> : vector<256x128xf32>
    %3 = tpu.matmul %0, %2, %cst {dimension_numbers = #tpu.dot_dimension_numbers<[1], [0], [0], [1], [0, 0, 1, 1], [], []>} : vector<256x128xf32>, vector<128x128xf32>, vector<256x128xf32> -> vector<256x128xf32>
    %4 = vector.extract_strided_slice %1 {offsets = [0, 0], sizes = [1, 128], strides = [1, 1]} : vector<2x128xf32> to vector<1x128xf32>
    %5 = vector.broadcast %4 : vector<1x128xf32> to vector<256x128xf32>
    %6 = arith.addf %3, %5 : vector<256x128xf32>
    %c0_5 = arith.constant 0 : index
    %c0_6 = arith.constant 0 : index
    %7 = vector.load %arg2[%c0_5, %c0_6] : memref<256x128xbf16, #tpu.memory_space<vmem>>, vector<256x128xbf16>
    %8 = arith.extf %7 : vector<256x128xbf16> to vector<256x128xf32>
    %9 = arith.mulf %6, %8 : vector<256x128xf32>
    %10 = math.tanh %9 : vector<256x128xf32>
    %11 = arith.subf %9, %10 : vector<256x128xf32>
    %c0_7 = arith.constant 0 : index
    %c0_8 = arith.constant 0 : index
    %12 = vector.load %arg4[%c0_7, %c0_8] : memref<128x128xf32, #tpu.memory_space<vmem>>, vector<128x128xf32>
    %cst_9 = arith.constant dense<0.000000e+00> : vector<256x128xf32>
    %13 = tpu.matmul %11, %12, %cst_9 {dimension_numbers = #tpu.dot_dimension_numbers<[1], [0], [0], [1], [0, 0, 1, 1], [], []>} : vector<256x128xf32>, vector<128x128xf32>, vector<256x128xf32> -> vector<256x128xf32>
    %14 = vector.extract_strided_slice %1 {offsets = [1, 0], sizes = [1, 128], strides = [1, 1]} : vector<2x128xf32> to vector<1x128xf32>
    %15 = vector.broadcast %14 : vector<1x128xf32> to vector<256x128xf32>
    %16 = arith.addf %13, %15 : vector<256x128xf32>
    %c0_10 = arith.constant 0 : index
    %c0_11 = arith.constant 0 : index
    %17 = vector.load %arg6[%c0_10, %c0_11] : memref<256x128xf32, #tpu.memory_space<vmem>>, vector<256x128xf32>
    tpu.vector_store %arg6[%c0_10, %c0_11], %16 {strides = array<i32>} : memref<256x128xf32, #tpu.memory_space<vmem>>, vector<256x128xf32>,
    return
  }
  func.func @transform_0(%arg0: i32) -> (i32, i32) {
    %c0_i32 = arith.constant 0 : i32
    %c0_i32_0 = arith.constant 0 : i32
    return %arg0, %c0_i32 : i32, i32
  }
  func.func @transform_1(%arg0: i32) -> (i32, i32) {
    %c0_i32 = arith.constant 0 : i32
    %c0_i32_0 = arith.constant 0 : i32
    return %arg0, %c0_i32 : i32, i32
  }
  func.func @transform_2(%arg0: i32) -> (i32, i32) {
    %c0_i32 = arith.constant 0 : i32
    %c0_i32_0 = arith.constant 0 : i32
    %c0_i32_1 = arith.constant 0 : i32
    return %c0_i32, %c0_i32_0 : i32, i32
  }
  func.func @transform_3(%arg0: i32) -> (i32, i32) {
    %c0_i32 = arith.constant 0 : i32
    %c0_i32_0 = arith.constant 0 : i32
    %c0_i32_1 = arith.constant 0 : i32
    return %c0_i32, %c0_i32_0 : i32, i32
  }
  func.func @transform_4(%arg0: i32) -> (i32, i32) {
    %c0_i32 = arith.constant 0 : i32
    %c0_i32_0 = arith.constant 0 : i32
    %c0_i32_1 = arith.constant 0 : i32
    return %c0_i32, %c0_i32_0 : i32, i32
  }
  func.func @transform_5(%arg0: i32) -> (i32, i32) {
    %c0_i32 = arith.constant 0 : i32
    %c0_i32_0 = arith.constant 0 : i32
    return %arg0, %c0_i32 : i32, i32
  }
}

</mosaic_0001>

<bundles_post_ra>
// kernel: tpu_custom_call.1
= control target key start
LH: loop header
LB: loop body
LE: loop exit
PB: predicated region body
PF: predicated region fallthrough
CT: control target
= control target key end

     0   :  { %10 = vsyncpa [#allocation3], 0  ;;  %s1710_s0 = inlined_call_operand.hbm [shape: f32[256,128], index: 0, kind: input, shape index: {}]   ;;  %s1711_s1 = inlined_call_operand.hbm [shape: bf16[256,128], index: 1, kind: input, shape index: {}]   ;;  %s1712_s2 = inlined_call_operand.hbm [shape: f32[128,128], index: 2, kind: input, shape index: {}]   ;;  %s1713_s3 = inlined_call_operand.hbm [shape: f32[128,128], index: 3, kind: input, shape index: {}]   ;;  %s1714_s4 = inlined_call_operand.hbm [shape: f32[2,128], index: 4, kind: input, shape index: {}]   ;;  %s1715_s5 = inlined_call_operand.hbm [shape: f32[256,128], index: 5, kind: output, shape index: {}]  }
   0x1   :  { %11 = vsyncpa [#allocation6], 0 }
   0x2   :  { %12 = vsyncpa [#allocation9], 0 }
   0x3   :  { %13 = vsyncpa [#allocation4], 0  ;;  %s1434_s18 = smov [#allocation5]   ;;  %s1294_s22 = scalar_lea.hbm %s1711_s1, 2048 }
   0x4   :  { %s31_s19 = sshll.u32 %s1434_s18, 4  ;;  %p1295_p0 = scmp.ne.s32.totalorder %s1711_s1, %s1294_s22  ;;  %s32_s19 = int_to_ptr.vmem [resolvable:$true] %s31_s19 }
   0x5   :  { %p1298_p1 = scmp.lt.u32.totalorder %s1294_s22, %s1711_s1 }
   0x7   :  { %p1300_p2 = pnand %p1298_p1, %p1295_p0 }
   0x9   :  { %1303 = shalt.err (!%p1300_p2)
}
   0xa   :  { %s1304_s27 = scalar_lea.vmem %s32_s19, 2048  ;;  %p1309_p4 = scmp.lt.s32.totalorder %s32_s19, %s32_s19 }
   0xb   :  { %p1305_p3 = scmp.ne.s32.totalorder %s32_s19, %s1304_s27  ;;  %p1310_p5 = scmp.lt.s32.totalorder %s1304_s27, %s1304_s27 }
   0xd   :  { %p1311_p6 = por %p1310_p5, %p1309_p4 }
   0xf   :  { %p1312_p7 = pnand %p1311_p6, %p1305_p3 }
  0x11   :  { %1315 = shalt.err (!%p1312_p7)
}
  0x12   :  { %s1435_s28 = smov 64   ;;  %s1436_s29 = smov 4  }
  0x13   :  { %37 = dma.hbm_to_vmem [thread:$0]  %s1711_s1, 2048, %s32_s19, [#allocation6], %s1435_s28, %s1435_s28, %s1436_s29  }
  0x14   :  { %s1437_s7 = smov [#allocation8]   ;;  %s1438_s9 = smov [#allocation2]  }
  0x15   :  { %s55_s8 = sshll.u32 %s1437_s7, 4  ;;  %s19_s10 = sshll.u32 %s1438_s9, 4  ;;  %s56_s8 = int_to_ptr.vmem [resolvable:$true] %s55_s8  ;;  %s20_s10 = int_to_ptr.vmem [resolvable:$true] %s19_s10 }
  0x16   :  { %s1316_s13 = scalar_lea.hbm %s1713_s3, 2048 }
  0x17   :  { %p1317_p8 = scmp.ne.s32.totalorder %s1713_s3, %s1316_s13  ;;  %p1320_p9 = scmp.lt.u32.totalorder %s1316_s13, %s1713_s3 }
  0x19   :  { %p1322_p10 = pnand %p1320_p9, %p1317_p8 }
  0x1b   :  { %1325 = shalt.err (!%p1322_p10)
}
  0x1c   :  { %s1326_s1 = scalar_lea.vmem %s56_s8, 2048  ;;  %p1331_p12 = scmp.lt.s32.totalorder %s56_s8, %s56_s8 }
  0x1d   :  { %p1327_p11 = scmp.ne.s32.totalorder %s56_s8, %s1326_s1  ;;  %p1332_p13 = scmp.lt.s32.totalorder %s1326_s1, %s1326_s1 }
  0x1f   :  { %p1333_p0 = por %p1332_p13, %p1331_p12 }
  0x21   :  { %p1334_p1 = pnand %p1333_p0, %p1327_p11 }
  0x23   :  { %1337 = shalt.err (!%p1334_p1)
}
  0x24   :  { %s1439_s18 = smov 128   ;;  %s1440_s19 = smov 8  }
  0x25   :  { %61 = dma.hbm_to_vmem [thread:$0]  %s1713_s3, 2048, %s56_s8, [#allocation9], %s1439_s18, %s1439_s18, %s1440_s19  }
  0x26   :  { %s1338_s24 = scalar_lea.hbm %s1710_s0, 4096 }
  0x27   :  { %p1339_p2 = scmp.ne.s32.totalorder %s1710_s0, %s1338_s24  ;;  %p1342_p3 = scmp.lt.u32.totalorder %s1338_s24, %s1710_s0 }
  0x29   :  { %p1344_p4 = pnand %p1342_p3, %p1339_p2 }
  0x2b   :  { %1347 = shalt.err (!%p1344_p4)
}
  0x2c   :  { %s1348_s29 = scalar_lea.vmem %s20_s10, 4096  ;;  %p1353_p6 = scmp.lt.s32.totalorder %s20_s10, %s20_s10 }
  0x2d   :  { %p1349_p5 = scmp.ne.s32.totalorder %s20_s10, %s1348_s29  ;;  %p1354_p7 = scmp.lt.s32.totalorder %s1348_s29, %s1348_s29 }
  0x2f   :  { %p1355_p8 = por %p1354_p7, %p1353_p6 }
  0x31   :  { %p1356_p9 = pnand %p1355_p8, %p1349_p5 }
  0x33   :  { %1359 = shalt.err (!%p1356_p9)
}
  0x34   :  { %25 = dma.hbm_to_vmem [thread:$0]  %s1710_s0, 4096, %s20_s10, [#allocation3], %s1439_s18, %s1439_s18, %s1440_s19  }
  0x35   :  { %s1441_s6 = smov [#allocation7]   ;;  %s1442_s8 = smov [#allocation10]  }
  0x36   :  { %s43_s7 = sshll.u32 %s1441_s6, 4  ;;  %s68_s9 = sshll.u32 %s1442_s8, 4  ;;  %s44_s7 = int_to_ptr.vmem [resolvable:$true] %s43_s7  ;;  %s69_s9 = int_to_ptr.vmem [resolvable:$true] %s68_s9 }
  0x37   :  { %s1360_s13 = scalar_lea.hbm %s1712_s2, 2048 }
  0x38   :  { %p1361_p10 = scmp.ne.s32.totalorder %s1712_s2, %s1360_s13  ;;  %p1364_p11 = scmp.lt.u32.totalorder %s1360_s13, %s1712_s2 }
  0x3a   :  { %p1366_p12 = pnand %p1364_p11, %p1361_p10 }
  0x3c   :  { %1369 = shalt.err (!%p1366_p12)
}
  0x3d   :  { %s1370_s0 = scalar_lea.vmem %s44_s7, 2048  ;;  %p1375_p0 = scmp.lt.s32.totalorder %s44_s7, %s44_s7 }
  0x3e   :  { %p1371_p13 = scmp.ne.s32.totalorder %s44_s7, %s1370_s0  ;;  %p1376_p1 = scmp.lt.s32.totalorder %s1370_s0, %s1370_s0 }
  0x40   :  { %p1377_p2 = por %p1376_p1, %p1375_p0 }
  0x42   :  { %p1378_p3 = pnand %p1377_p2, %p1371_p13 }
  0x44   :  { %1381 = shalt.err (!%p1378_p3)
}
  0x45   :  { %49 = dma.hbm_to_vmem [thread:$0]  %s1712_s2, 2048, %s44_s7, [#allocation6], %s1439_s18, %s1439_s18, %s1440_s19  }
  0x46   :  { %s1382_s22 = scalar_lea.hbm %s1714_s4, 32 }
  0x47   :  { %p1383_p4 = scmp.ne.s32.totalorder %s1714_s4, %s1382_s22  ;;  %p1386_p5 = scmp.lt.u32.totalorder %s1382_s22, %s1714_s4 }
  0x49   :  { %p1388_p6 = pnand %p1386_p5, %p1383_p4 }
  0x4b   :  { %1391 = shalt.err (!%p1388_p6)
}
  0x4c   :  { %s1392_s27 = scalar_lea.vmem %s69_s9, 32  ;;  %p1397_p8 = scmp.lt.s32.totalorder %s69_s9, %s69_s9 }
  0x4d   :  { %p1393_p7 = scmp.ne.s32.totalorder %s69_s9, %s1392_s27  ;;  %p1398_p9 = scmp.lt.s32.totalorder %s1392_s27, %s1392_s27 }
  0x4f   :  { %p1399_p10 = por %p1398_p9, %p1397_p8 }
  0x51   :  { %p1400_p11 = pnand %p1399_p10, %p1393_p7 }
  0x53   :  { %1403 = shalt.err (!%p1400_p11)
}
  0x54   :  { %71 = dma.hbm_to_vmem [thread:$0]  %s1714_s4, 32, %s69_s9, [#allocation9]  }
  0x55   :  { %1426 = dma.done.wait [#allocation3], 4096  }
  0x56   :  { %1427 = vsyncadd [#allocation3], 4294963200 }
  0x57   :  { %1428 = dma.done.wait [#allocation6], 4096  }
  0x58   :  { %1429 = vsyncadd [#allocation6], 4294963200 }
  0x59   :  { %1430 = dma.done.wait [#allocation9], 2080  }
  0x5a   :  { %1431 = vsyncadd [#allocation9], 4294965216  ;;  %v120_v0 = vld [vmem:[#allocation7] sm:$0xff]  ;;  %v121_v1 = vld [vmem:[#allocation7 + $0x8] sm:$0xff]  ;;  %s1443_s4 = smov [#allocation11]  }
  0x5b   :  { %v122_v2 = vld [vmem:[#allocation7 + $0x10] sm:$0xff]  ;;  %v1156_v3 = vpack.c.bf16 %v121_v1, %v120_v0  ;;  %v123_v4 = vld [vmem:[#allocation7 + $0x18] sm:$0xff]  ;;  %v124_v6 = vld [vmem:[#allocation7 + $0x20] sm:$0xff]  ;;  %s807_s29 = sshll.u32 %s1443_s4, 4  ;;  %s808_s29 = int_to_ptr.vmem [resolvable:$true] %s807_s29 }
  0x5c   :  { %v1160_v5 = vpack.c.bf16 %v123_v4, %v122_v2  ;;  %v125_v7 = vld [vmem:[#allocation7 + $0x28] sm:$0xff]  ;;  %v87_v9 = vld [vmem:[#allocation2] sm:$0xff]  ;;  %v126_v10 = vld [vmem:[#allocation7 + $0x30] sm:$0xff]  ;;  %s1404_s3 = scalar_lea.vmem %s808_s29, 4096  ;;  %p1409_p13 = scmp.lt.s32.totalorder %s808_s29, %s808_s29 }
  0x5d   :  { %1157 = vmatprep.subr.bf16.mxu0 %v1156_v3  ;;  %v1164_v8 = vpack.c.bf16 %v125_v7, %v124_v6  ;;  %v127_v11 = vld [vmem:[#allocation7 + $0x38] sm:$0xff]  ;;  %1028 = vmatprep.mubr.f32.mxu0 %v87_v9  ;;  %v128_v13 = vld [vmem:[#allocation7 + $0x40] sm:$0xff]  ;;  %v129_v14 = vld [vmem:[#allocation7 + $0x48] sm:$0xff]  ;;  %p1405_p12 = scmp.ne.s32.totalorder %s808_s29, %s1404_s3  ;;  %p1410_p0 = scmp.lt.s32.totalorder %s1404_s3, %s1404_s3 }
  0x5e   :  { %1159 = vmatpush3.bf16.msra.mxu0 %v1156_v3  ;;  %v1168_v12 = vpack.c.bf16 %v127_v11, %v126_v10  ;;  %v1172_v15 = vpack.c.bf16 %v129_v14, %v128_v13  ;;  %v130_v16 = vld [vmem:[#allocation7 + $0x50] sm:$0xff]  ;;  %v131_v17 = vld [vmem:[#allocation7 + $0x58] sm:$0xff]  ;;  %v525_v18 = vld [vmem:[#allocation8] sm:$0xff] }
  0x5f   :  { %1161 = vmatprep.subr.bf16.mxu0 %v1160_v5  ;;  %v526_v19 = vld [vmem:[#allocation8 + $0x8] sm:$0xff]  ;;  %v527_v20 = vld [vmem:[#allocation8 + $0x10] sm:$0xff]  ;;  %v1176_v21 = vpack.c.bf16 %v131_v17, %v130_v16  ;;  %v132_v22 = vld [vmem:[#allocation7 + $0x60] sm:$0xff]  ;;  %v136_v16 = vlaneseq  ;;  %p1411_p1 = por %p1410_p0, %p1409_p13 }
  0x60   :  { %v1188_v23 = vpack.c.bf16 %v526_v19, %v525_v18  ;;  %v528_v24 = vld [vmem:[#allocation8 + $0x18] sm:$0xff]  ;;  %v133_v25 = vld [vmem:[#allocation7 + $0x68] sm:$0xff]  ;;  %v529_v27 = vld [vmem:[#allocation8 + $0x20] sm:$0xff] }
  0x61   :  { %v1192_v26 = vpack.c.bf16 %v528_v24, %v527_v20  ;;  %v530_v28 = vld [vmem:[#allocation8 + $0x28] sm:$0xff]  ;;  %v1180_v29 = vpack.c.bf16 %v133_v25, %v132_v22  ;;  %v134_v31 = vld [vmem:[#allocation7 + $0x70] sm:$0xff]  ;;  %v135_v32 = vld [vmem:[#allocation7 + $0x78] sm:$0xff]  ;;  %v1543_v17 = vshrl.u32 %v136_v16, 7  ;;  %p1412_p2 = pnand %p1411_p1, %p1405_p12 }
  0x62   :  { %1163 = vmatpush3.bf16.msra.mxu0 %v1160_v5  ;;  %1189 = vmatprep.subr.bf16.mxu1 %v1188_v23  ;;  %v1196_v30 = vpack.c.bf16 %v530_v28, %v529_v27  ;;  %v1184_v33 = vpack.c.bf16 %v135_v32, %v134_v31  ;;  %v88_v34 = vld [vmem:[#allocation2 + $0x8] sm:$0xff]  ;;  %v89_v35 = vld [vmem:[#allocation2 + $0x10] sm:$0xff]  ;;  %v90_v36 = vld [vmem:[#allocation2 + $0x18] sm:$0xff] }
  0x63   :  { %1165 = vmatprep.subr.bf16.mxu0 %v1164_v8  ;;  %1191 = vmatpush3.bf16.msra.mxu1 %v1188_v23  ;;  %v91_v37 = vld [vmem:[#allocation2 + $0x20] sm:$0xff]  ;;  %v92_v38 = vld [vmem:[#allocation2 + $0x28] sm:$0xff]  ;;  %v93_v39 = vld [vmem:[#allocation2 + $0x30] sm:$0xff]  ;;  %v138_v18 = vsub.s32 0, %v1543_v17 }
  0x64   :  { %1193 = vmatprep.subr.bf16.mxu1 %v1192_v26  ;;  %v94_v40 = vld [vmem:[#allocation2 + $0x38] sm:$0xff]  ;;  %v95_v41 = vld [vmem:[#allocation2 + $0x40] sm:$0xff]  ;;  %v96_v42 = vld [vmem:[#allocation2 + $0x48] sm:$0xff] }
  0x65   :  { %v97_v43 = vld [vmem:[#allocation2 + $0x50] sm:$0xff]  ;;  %v98_v44 = vld [vmem:[#allocation2 + $0x58] sm:$0xff]  ;;  %v99_v45 = vld [vmem:[#allocation2 + $0x60] sm:$0xff] }
  0x66   :  { %1167 = vmatpush3.bf16.msra.mxu0 %v1164_v8  ;;  %v100_v46 = vld [vmem:[#allocation2 + $0x68] sm:$0xff]  ;;  %v101_v47 = vld [vmem:[#allocation2 + $0x70] sm:$0xff]  ;;  %v102_v48 = vld [vmem:[#allocation2 + $0x78] sm:$0xff] }
  0x67   :  { %1169 = vmatprep.subr.bf16.mxu0 %v1168_v12  ;;  %1195 = vmatpush3.bf16.msra.mxu1 %v1192_v26  ;;  %v103_v49 = vld [vmem:[#allocation2 + $0x80] sm:$0xff]  ;;  %v104_v50 = vld [vmem:[#allocation2 + $0x88] sm:$0xff]  ;;  %v105_v51 = vld [vmem:[#allocation2 + $0x90] sm:$0xff] }
  0x68   :  { %1197 = vmatprep.subr.bf16.mxu1 %v1196_v30  ;;  %v106_v52 = vld [vmem:[#allocation2 + $0x98] sm:$0xff]  ;;  %v107_v53 = vld [vmem:[#allocation2 + $0xa0] sm:$0xff]  ;;  %v108_v54 = vld [vmem:[#allocation2 + $0xa8] sm:$0xff] }
  0x69   :  { %v109_v55 = vld [vmem:[#allocation2 + $0xb0] sm:$0xff]  ;;  %v110_v56 = vld [vmem:[#allocation2 + $0xb8] sm:$0xff]  ;;  %v111_v57 = vld [vmem:[#allocation2 + $0xc0] sm:$0xff] }
  0x6a   :  { %1171 = vmatpush3.bf16.msra.mxu0 %v1168_v12  ;;  %v112_v58 = vld [vmem:[#allocation2 + $0xc8] sm:$0xff]  ;;  %v113_v59 = vld [vmem:[#allocation2 + $0xd0] sm:$0xff]  ;;  %v114_v60 = vld [vmem:[#allocation2 + $0xd8] sm:$0xff] }
  0x6b   :  { %1173 = vmatprep.subr.bf16.mxu0 %v1172_v15  ;;  %1199 = vmatpush3.bf16.msra.mxu1 %v1196_v30  ;;  %v115_v61 = vld [vmem:[#allocation2 + $0xe0] sm:$0xff]  ;;  %v116_v62 = vld [vmem:[#allocation2 + $0xe8] sm:$0xff]  ;;  %v117_v63 = vld [vmem:[#allocation2 + $0xf0] sm:$0xff] }
  0x6c   :  { %v118_v0 = vld [vmem:[#allocation2 + $0xf8] sm:$0xff]  ;;  %v531_v1 = vld [vmem:[#allocation8 + $0x30] sm:$0xff]  ;;  %v533_v4 = vld [vmem:[#allocation8 + $0x40] sm:$0xff] }
  0x6d   :  { %v532_v2 = vld [vmem:[#allocation8 + $0x38] sm:$0xff]  ;;  %v534_v5 = vld [vmem:[#allocation8 + $0x48] sm:$0xff]  ;;  %v535_v7 = vld [vmem:[#allocation8 + $0x50] sm:$0xff] }
  0x6e   :  { %1175 = vmatpush3.bf16.msra.mxu0 %v1172_v15  ;;  %v1200_v3 = vpack.c.bf16 %v532_v2, %v531_v1  ;;  %v1204_v6 = vpack.c.bf16 %v534_v5, %v533_v4  ;;  %v536_v8 = vld [vmem:[#allocation8 + $0x58] sm:$0xff]  ;;  %v537_v10 = vld [vmem:[#allocation8 + $0x60] sm:$0xff]  ;;  %v538_v11 = vld [vmem:[#allocation8 + $0x68] sm:$0xff] }
  0x6f   :  { %1177 = vmatprep.subr.bf16.mxu0 %v1176_v21  ;;  %v1208_v9 = vpack.c.bf16 %v536_v8, %v535_v7  ;;  %v1212_v12 = vpack.c.bf16 %v538_v11, %v537_v10  ;;  %v539_v13 = vld [vmem:[#allocation8 + $0x70] sm:$0xff]  ;;  %v540_v14 = vld [vmem:[#allocation8 + $0x78] sm:$0xff]  ;;  %v1546_v19 = vld [vmem:[#allocation10] sm:$0x3] }
  0x70   :  { %1201 = vmatprep.subr.bf16.mxu1 %v1200_v3  ;;  %v1216_v15 = vpack.c.bf16 %v540_v14, %v539_v13  ;;  %v822_v20 = vld [vmem:[#allocation5] sm:$0xff]   ;;  %v885_v24 = vld [vmem:[#allocation5 + $0x8] sm:$0xff]  }
  0x71   :  { %1203 = vmatpush3.bf16.msra.mxu1 %v1200_v3  ;;  %v824_v22 = vunpack.c.h.bf16 %v822_v20  ;;  %v823_v25 = vunpack.c.l.bf16 %v822_v20  ;;  %v828_v30 = vunpack.c.h.bf16 %v885_v24  ;;  %v827_v32 = vunpack.c.l.bf16 %v885_v24 }
  0x72   :  { %1179 = vmatpush3.bf16.msra.mxu0 %v1176_v21  ;;  %1205 = vmatprep.subr.bf16.mxu1 %v1204_v6  ;;  %v1549_v21 = vrot.slane %v1546_v19, %v138_v18 }
  0x73   :  { %1181 = vmatprep.subr.bf16.mxu0 %v1180_v29 }
  0x75   :  { %1207 = vmatpush3.bf16.msra.mxu1 %v1204_v6 }
  0x76   :  { %1183 = vmatpush3.bf16.msra.mxu0 %v1180_v29  ;;  %1209 = vmatprep.subr.bf16.mxu1 %v1208_v9 }
  0x77   :  { %1185 = vmatprep.subr.bf16.mxu0 %v1184_v33 }
  0x79   :  { %1211 = vmatpush3.bf16.msra.mxu1 %v1208_v9 }
  0x7a   :  { %1187 = vmatpush3.bf16.msra.mxu0 %v1184_v33  ;;  %1213 = vmatprep.subr.bf16.mxu1 %v1212_v12  ;;  %v886_v33 = vld [vmem:[#allocation5 + $0x10] sm:$0xff]  }
  0x7d   :  { %1029 = vmatmul.mubr.f32.vlgmr.msra.gmra.mrb[0].mxu0 %v88_v34  ;;  %1215 = vmatpush3.bf16.msra.mxu1 %v1212_v12  ;;  %v890_v12 = vld [vmem:[#allocation5 + $0x30] sm:$0xff]  }
  0x7e   :  { %1031 = vmatprep.mubr.f32.mxu0 %v89_v35  ;;  %1217 = vmatprep.subr.bf16.mxu1 %v1216_v15 }
  0x81   :  { %1032 = vmatmul.mubr.f32.gmra.mrb[2].mxu0 %v90_v36  ;;  %1219 = vmatpush3.bf16.msra.mxu1 %v1216_v15 }
  0x82   :  { %1034 = vmatprep.mubr.f32.mxu0 %v91_v37 }
  0x85   :  { %1035 = vmatmul.mubr.f32.gmra.mrb[4].mxu0 %v92_v38 }
  0x86   :  { %1037 = vmatprep.mubr.f32.mxu0 %v93_v39  ;;  %v832_v39 = vunpack.c.h.bf16 %v886_v33 }
  0x89   :  { %1038 = vmatmul.mubr.f32.gmra.mrb[6].mxu0 %v94_v40 }
  0x8a   :  { %1040 = vmatprep.mubr.f32.mxu0 %v95_v41 }
  0x8d   :  { %1041 = vmatmul.mubr.f32.gmra.mrb[8].mxu0 %v96_v42  ;;  %v831_v42 = vunpack.c.l.bf16 %v886_v33 }
  0x8e   :  { %1043 = vmatprep.mubr.f32.mxu0 %v97_v43  ;;  %v887_v43 = vld [vmem:[#allocation5 + $0x18] sm:$0xff]  }
  0x91   :  { %1044 = vmatmul.mubr.f32.gmra.mrb[10].mxu0 %v98_v44 }
  0x92   :  { %1046 = vmatprep.mubr.f32.mxu0 %v99_v45 }
  0x95   :  { %1047 = vmatmul.mubr.f32.gmra.mrb[12].mxu0 %v100_v46 }
  0x96   :  { %1049 = vmatprep.mubr.f32.mxu0 %v101_v47 }
  0x99   :  { %1050 = vmatmul.mubr.f32.gmra.mrb[14].mxu0 %v102_v48  ;;  %v836_v48 = vunpack.c.h.bf16 %v887_v43 }
  0x9a   :  { %1052 = vmatprep.mubr.f32.mxu0 %v103_v49 }
  0x9d   :  { %1053 = vmatmul.mubr.f32.gmra.mrb[16].mxu0 %v104_v50 }
  0x9e   :  { %1055 = vmatprep.mubr.f32.mxu0 %v105_v51  ;;  %v835_v51 = vunpack.c.l.bf16 %v887_v43 }
  0xa1   :  { %1056 = vmatmul.mubr.f32.gmra.mrb[18].mxu0 %v106_v52  ;;  %v888_v52 = vld [vmem:[#allocation5 + $0x20] sm:$0xff]  }
  0xa2   :  { %1058 = vmatprep.mubr.f32.mxu0 %v107_v53 }
  0xa5   :  { %1059 = vmatmul.mubr.f32.gmra.mrb[20].mxu0 %v108_v54 }
  0xa6   :  { %1061 = vmatprep.mubr.f32.mxu0 %v109_v55 }
  0xa9   :  { %1062 = vmatmul.mubr.f32.gmra.mrb[22].mxu0 %v110_v56 }
  0xaa   :  { %1064 = vmatprep.mubr.f32.mxu0 %v111_v57 }
  0xad   :  { %1065 = vmatmul.mubr.f32.gmra.mrb[24].mxu0 %v112_v58  ;;  %v840_v58 = vunpack.c.h.bf16 %v888_v52 }
  0xae   :  { %1067 = vmatprep.mubr.f32.mxu0 %v113_v59 }
  0xb1   :  { %1068 = vmatmul.mubr.f32.gmra.mrb[26].mxu0 %v114_v60 }
  0xb2   :  { %1070 = vmatprep.mubr.f32.mxu0 %v115_v61 }
  0xb5   :  { %1071 = vmatmul.mubr.f32.gmra.mrb[28].mxu0 %v116_v62  ;;  %v839_v62 = vunpack.c.l.bf16 %v888_v52 }
  0xb6   :  { %1073 = vmatprep.mubr.f32.mxu0 %v117_v63  ;;  %v889_v63 = vld [vmem:[#allocation5 + $0x28] sm:$0xff]  }
  0xb7   :  { %v844_v7 = vunpack.c.h.bf16 %v889_v63  ;;  %v843_v11 = vunpack.c.l.bf16 %v889_v63 }
  0xb9   :  { %1074 = vmatmul.mubr.f32.gmra.mrb[30].mxu0 %v118_v0 }
 0x150   :  { %v1030_v23 = vpop.f32.mrb[0].mxu0 }
 0x151   :  { %v212_v26 = vadd.f32 %v1030_v23, %v1549_v21  ;;  %v206_v27 = vpop.f32.mrb[1].mxu0  ;;  %v848_v23 = vunpack.c.h.bf16 %v890_v12 }
 0x152   :  { %v207_v28 = vadd.f32 %v206_v27, %v1549_v21  ;;  %v847_v27 = vunpack.c.l.bf16 %v890_v12 }
 0x153   :  { %v430_v29 = vmul.f32 %v824_v22, %v212_v26 }
 0x154   :  { %v1033_v31 = vpop.f32.mrb[2].mxu0  ;;  %v429_v34 = vmul.f32 %v823_v25, %v207_v28  ;;  %v891_v28 = vld [vmem:[#allocation5 + $0x38] sm:$0xff]  }
 0x155   :  { %1230 = vtanh.f32 %v430_v29  ;;  %v222_v35 = vadd.f32 %v1033_v31, %v1549_v21  ;;  %v216_v36 = vpop.f32.mrb[3].mxu0 }
 0x156   :  { %v217_v37 = vadd.f32 %v216_v36, %v1549_v21  ;;  %1232 = vtanh.f32 %v429_v34  ;;  %v852_v36 = vunpack.c.h.bf16 %v891_v28 }
 0x157   :  { %v432_v38 = vmul.f32 %v828_v30, %v222_v35 }
 0x158   :  { %v431_v40 = vmul.f32 %v827_v32, %v217_v37  ;;  %v1036_v41 = vpop.f32.mrb[4].mxu0 }
 0x159   :  { %1234 = vtanh.f32 %v432_v38  ;;  %v232_v44 = vadd.f32 %v1036_v41, %v1549_v21  ;;  %v226_v45 = vpop.f32.mrb[5].mxu0  ;;  %v892_v41 = vld [vmem:[#allocation5 + $0x40] sm:$0xff]  }
 0x15a   :  { %1236 = vtanh.f32 %v431_v40  ;;  %v227_v46 = vadd.f32 %v226_v45, %v1549_v21 }
 0x15b   :  { %v1557_v47 = vmul.f32 %v832_v39, %v232_v44 }
 0x15c   :  { %v433_v49 = vmul.f32 %v831_v42, %v227_v46  ;;  %v1039_v50 = vpop.f32.mrb[6].mxu0 }
 0x15d   :  { %1238 = vtanh.f32 %v1557_v47  ;;  %v242_v53 = vadd.f32 %v1039_v50, %v1549_v21  ;;  %v236_v54 = vpop.f32.mrb[7].mxu0 }
 0x15e   :  { %1240 = vtanh.f32 %v433_v49  ;;  %v237_v55 = vadd.f32 %v236_v54, %v1549_v21  ;;  %v893_v54 = vld [vmem:[#allocation5 + $0x48] sm:$0xff]  }
 0x15f   :  { %v1231_v56 = vpop.eup %1230  ;;  %v1562_v57 = vmul.f32 %v836_v48, %v242_v53  ;;  %v855_v53 = vunpack.c.l.bf16 %v892_v41 }
 0x160   :  { %v1233_v59 = vpop.eup %1232  ;;  %v1564_v60 = vmul.f32 %v835_v51, %v237_v55  ;;  %v1042_v61 = vpop.f32.mrb[8].mxu0  ;;  %v494_v4 = vsub.f32 %v430_v29, %v1231_v56 }
 0x161   :  { %1242 = vtanh.f32 %v1562_v57  ;;  %v252_v0 = vadd.f32 %v1042_v61, %v1549_v21  ;;  %v246_v1 = vpop.f32.mrb[9].mxu0  ;;  %v493_v2 = vsub.f32 %v429_v34, %v1233_v59 }
 0x162   :  { %1244 = vtanh.f32 %v1564_v60  ;;  %v247_v3 = vadd.f32 %v246_v1, %v1549_v21 }
 0x163   :  { %v1235_v5 = vpop.eup %1234  ;;  %v1570_v6 = vmul.f32 %v840_v58, %v252_v0  ;;  %1108 = vmatprep.mubr.f32.mxu1 %v493_v2  ;;  %v859_v2 = vunpack.c.l.bf16 %v893_v54 }
 0x164   :  { %v1237_v8 = vpop.eup %1236  ;;  %v1572_v9 = vmul.f32 %v839_v62, %v247_v3  ;;  %v1045_v10 = vpop.f32.mrb[10].mxu0  ;;  %1109 = vmatmul.mubr.f32.vlgmr.msra.gmra.mrb[0].mxu1 %v494_v4  ;;  %v496_v18 = vsub.f32 %v432_v38, %v1235_v5  ;;  %v860_v62 = vunpack.c.h.bf16 %v893_v54  ;;  %v894_v3 = vld [vmem:[#allocation5 + $0x50] sm:$0xff]  }
 0x165   :  { %1246 = vtanh.f32 %v1570_v6  ;;  %v262_v13 = vadd.f32 %v1045_v10, %v1549_v21  ;;  %v256_v14 = vpop.f32.mrb[11].mxu0  ;;  %v495_v15 = vsub.f32 %v431_v40, %v1237_v8  ;;  %v851_v40 = vunpack.c.l.bf16 %v891_v28 }
 0x166   :  { %1248 = vtanh.f32 %v1572_v9  ;;  %v257_v16 = vadd.f32 %v256_v14, %v1549_v21 }
 0x167   :  { %v1239_v20 = vpop.eup %1238  ;;  %v1578_v22 = vmul.f32 %v844_v7, %v262_v13  ;;  %1111 = vmatprep.mubr.f32.mxu1 %v495_v15  ;;  %v863_v15 = vunpack.c.l.bf16 %v894_v3 }
 0x168   :  { %v1241_v24 = vpop.eup %1240  ;;  %v1580_v25 = vmul.f32 %v843_v11, %v257_v16  ;;  %v1048_v26 = vpop.f32.mrb[12].mxu0  ;;  %1112 = vmatmul.mubr.f32.gmra.mrb[2].mxu1 %v496_v18  ;;  %v498_v33 = vsub.f32 %v1557_v47, %v1239_v20  ;;  %v864_v11 = vunpack.c.h.bf16 %v894_v3  ;;  %v895_v16 = vld [vmem:[#allocation5 + $0x58] sm:$0xff]  }
 0x169   :  { %1250 = vtanh.f32 %v1578_v22  ;;  %v272_v29 = vadd.f32 %v1048_v26, %v1549_v21  ;;  %v266_v30 = vpop.f32.mrb[13].mxu0  ;;  %v497_v31 = vsub.f32 %v433_v49, %v1241_v24  ;;  %v856_v49 = vunpack.c.h.bf16 %v892_v41 }
 0x16a   :  { %1252 = vtanh.f32 %v1580_v25  ;;  %v267_v32 = vadd.f32 %v266_v30, %v1549_v21 }
 0x16b   :  { %v1243_v34 = vpop.eup %1242  ;;  %v1587_v35 = vmul.f32 %v848_v23, %v272_v29  ;;  %1114 = vmatprep.mubr.f32.mxu1 %v497_v31  ;;  %v867_v31 = vunpack.c.l.bf16 %v895_v16 }
 0x16c   :  { %v1245_v37 = vpop.eup %1244  ;;  %v1589_v38 = vmul.f32 %v847_v27, %v267_v32  ;;  %v1051_v39 = vpop.f32.mrb[14].mxu0  ;;  %1115 = vmatmul.mubr.f32.gmra.mrb[4].mxu1 %v498_v33  ;;  %v500_v46 = vsub.f32 %v1562_v57, %v1243_v34  ;;  %v868_v27 = vunpack.c.h.bf16 %v895_v16  ;;  %v896_v32 = vld [vmem:[#allocation5 + $0x60] sm:$0xff]  }
 0x16d   :  { %1254 = vtanh.f32 %v1587_v35  ;;  %v282_v42 = vadd.f32 %v1051_v39, %v1549_v21  ;;  %v276_v43 = vpop.f32.mrb[15].mxu0  ;;  %v499_v44 = vsub.f32 %v1564_v60, %v1245_v37 }
 0x16e   :  { %1256 = vtanh.f32 %v1589_v38  ;;  %v277_v45 = vadd.f32 %v276_v43, %v1549_v21 }
 0x16f   :  { %v1247_v47 = vpop.eup %1246  ;;  %v1597_v48 = vmul.f32 %v852_v36, %v282_v42  ;;  %1117 = vmatprep.mubr.f32.mxu1 %v499_v44  ;;  %v871_v44 = vunpack.c.l.bf16 %v896_v32 }
 0x170   :  { %v1249_v50 = vpop.eup %1248  ;;  %v1599_v51 = vmul.f32 %v851_v40, %v277_v45  ;;  %v1054_v52 = vpop.f32.mrb[16].mxu0  ;;  %1118 = vmatmul.mubr.f32.gmra.mrb[6].mxu1 %v500_v46  ;;  %v502_v59 = vsub.f32 %v1570_v6, %v1247_v47  ;;  %v872_v40 = vunpack.c.h.bf16 %v896_v32  ;;  %v897_v45 = vld [vmem:[#allocation5 + $0x68] sm:$0xff]  }
 0x171   :  { %1258 = vtanh.f32 %v1597_v48  ;;  %v292_v55 = vadd.f32 %v1054_v52, %v1549_v21  ;;  %v286_v56 = vpop.f32.mrb[17].mxu0  ;;  %v501_v58 = vsub.f32 %v1572_v9, %v1249_v50 }
 0x172   :  { %1260 = vtanh.f32 %v1599_v51  ;;  %v287_v57 = vadd.f32 %v286_v56, %v1549_v21 }
 0x173   :  { %v1251_v60 = vpop.eup %1250  ;;  %v1607_v61 = vmul.f32 %v856_v49, %v292_v55  ;;  %1120 = vmatprep.mubr.f32.mxu1 %v501_v58  ;;  %v875_v58 = vunpack.c.l.bf16 %v897_v45 }
 0x174   :  { %v1253_v63 = vpop.eup %1252  ;;  %v1609_v0 = vmul.f32 %v855_v53, %v287_v57  ;;  %v1057_v1 = vpop.f32.mrb[18].mxu0  ;;  %1121 = vmatmul.mubr.f32.gmra.mrb[8].mxu1 %v502_v59  ;;  %v504_v8 = vsub.f32 %v1578_v22, %v1251_v60  ;;  %v876_v53 = vunpack.c.h.bf16 %v897_v45  ;;  %v898_v57 = vld [vmem:[#allocation5 + $0x70] sm:$0xff]   ;;  %v543_v45 = vsub.s32 1, %v1543_v17 }
 0x175   :  { %1262 = vtanh.f32 %v1607_v61  ;;  %v302_v4 = vadd.f32 %v1057_v1, %v1549_v21  ;;  %v296_v5 = vpop.f32.mrb[19].mxu0  ;;  %v503_v7 = vsub.f32 %v1580_v25, %v1253_v63 }
 0x176   :  { %1264 = vtanh.f32 %v1609_v0  ;;  %v297_v6 = vadd.f32 %v296_v5, %v1549_v21 }
 0x177   :  { %v1255_v9 = vpop.eup %1254  ;;  %v1617_v10 = vmul.f32 %v860_v62, %v302_v4  ;;  %1123 = vmatprep.mubr.f32.mxu1 %v503_v7  ;;  %v879_v7 = vunpack.c.l.bf16 %v898_v57 }
 0x178   :  { %v1257_v12 = vpop.eup %1256  ;;  %v1619_v13 = vmul.f32 %v859_v2, %v297_v6  ;;  %v1060_v14 = vpop.f32.mrb[20].mxu0  ;;  %1124 = vmatmul.mubr.f32.gmra.mrb[10].mxu1 %v504_v8  ;;  %v506_v24 = vsub.f32 %v1587_v35, %v1255_v9  ;;  %v880_v2 = vunpack.c.h.bf16 %v898_v57  ;;  %v899_v6 = vld [vmem:[#allocation5 + $0x78] sm:$0xff]  }
 0x179   :  { %1266 = vtanh.f32 %v1617_v10  ;;  %v312_v18 = vadd.f32 %v1060_v14, %v1549_v21  ;;  %v306_v20 = vpop.f32.mrb[21].mxu0  ;;  %v505_v23 = vsub.f32 %v1589_v38, %v1257_v12 }
 0x17a   :  { %1268 = vtanh.f32 %v1619_v13  ;;  %v307_v22 = vadd.f32 %v306_v20, %v1549_v21 }
 0x17b   :  { %v1259_v25 = vpop.eup %1258  ;;  %v1627_v26 = vmul.f32 %v864_v11, %v312_v18  ;;  %1126 = vmatprep.mubr.f32.mxu1 %v505_v23  ;;  %v883_v23 = vunpack.c.l.bf16 %v899_v6 }
 0x17c   :  { %v1261_v28 = vpop.eup %1260  ;;  %v1629_v29 = vmul.f32 %v863_v15, %v307_v22  ;;  %v1063_v30 = vpop.f32.mrb[22].mxu0  ;;  %1127 = vmatmul.mubr.f32.gmra.mrb[12].mxu1 %v506_v24  ;;  %v508_v37 = vsub.f32 %v1597_v48, %v1259_v25  ;;  %v884_v15 = vunpack.c.h.bf16 %v899_v6 }
 0x17d   :  { %1270 = vtanh.f32 %v1627_v26  ;;  %v322_v33 = vadd.f32 %v1063_v30, %v1549_v21  ;;  %v316_v34 = vpop.f32.mrb[23].mxu0  ;;  %v507_v36 = vsub.f32 %v1599_v51, %v1261_v28 }
 0x17e   :  { %1272 = vtanh.f32 %v1629_v29  ;;  %v317_v35 = vadd.f32 %v316_v34, %v1549_v21 }
 0x17f   :  { %v1263_v38 = vpop.eup %1262  ;;  %v1637_v39 = vmul.f32 %v868_v27, %v322_v33  ;;  %1129 = vmatprep.mubr.f32.mxu1 %v507_v36 }
 0x180   :  { %v1265_v41 = vpop.eup %1264  ;;  %v1639_v42 = vmul.f32 %v867_v31, %v317_v35  ;;  %v1066_v43 = vpop.f32.mrb[24].mxu0  ;;  %1130 = vmatmul.mubr.f32.gmra.mrb[14].mxu1 %v508_v37  ;;  %v510_v50 = vsub.f32 %v1607_v61, %v1263_v38 }
 0x181   :  { %1274 = vtanh.f32 %v1637_v39  ;;  %v332_v46 = vadd.f32 %v1066_v43, %v1549_v21  ;;  %v326_v47 = vpop.f32.mrb[25].mxu0  ;;  %v509_v49 = vsub.f32 %v1609_v0, %v1265_v41 }
 0x182   :  { %1276 = vtanh.f32 %v1639_v42  ;;  %v327_v48 = vadd.f32 %v326_v47, %v1549_v21 }
 0x183   :  { %v1267_v51 = vpop.eup %1266  ;;  %v454_v52 = vmul.f32 %v872_v40, %v332_v46  ;;  %1132 = vmatprep.mubr.f32.mxu1 %v509_v49  ;;  %v1661_v46 = vrot.slane %v1546_v19, %v543_v45 }
 0x184   :  { %v1269_v54 = vpop.eup %1268  ;;  %v453_v55 = vmul.f32 %v871_v44, %v327_v48  ;;  %v1069_v56 = vpop.f32.mrb[26].mxu0  ;;  %1133 = vmatmul.mubr.f32.gmra.mrb[16].mxu1 %v510_v50  ;;  %v512_v61 = vsub.f32 %v1617_v10, %v1267_v51 }
 0x185   :  { %1278 = vtanh.f32 %v454_v52  ;;  %v342_v59 = vadd.f32 %v1069_v56, %v1549_v21  ;;  %v336_v60 = vpop.f32.mrb[27].mxu0  ;;  %v511_v62 = vsub.f32 %v1619_v13, %v1269_v54 }
 0x186   :  { %1280 = vtanh.f32 %v453_v55  ;;  %v337_v63 = vadd.f32 %v336_v60, %v1549_v21 }
 0x187   :  { %v1271_v0 = vpop.eup %1270  ;;  %v456_v1 = vmul.f32 %v876_v53, %v342_v59  ;;  %1135 = vmatprep.mubr.f32.mxu1 %v511_v62 }
 0x188   :  { %v1273_v3 = vpop.eup %1272  ;;  %v455_v4 = vmul.f32 %v875_v58, %v337_v63  ;;  %v1072_v5 = vpop.f32.mrb[28].mxu0  ;;  %1136 = vmatmul.mubr.f32.gmra.mrb[18].mxu1 %v512_v61  ;;  %v514_v10 = vsub.f32 %v1627_v26, %v1271_v0 }
 0x189   :  { %1282 = vtanh.f32 %v456_v1  ;;  %v352_v8 = vadd.f32 %v1072_v5, %v1549_v21  ;;  %v346_v9 = vpop.f32.mrb[29].mxu0  ;;  %v513_v11 = vsub.f32 %v1629_v29, %v1273_v3 }
 0x18a   :  { %1284 = vtanh.f32 %v455_v4  ;;  %v347_v12 = vadd.f32 %v346_v9, %v1549_v21 }
 0x18b   :  { %v1275_v13 = vpop.eup %1274  ;;  %v458_v14 = vmul.f32 %v880_v2, %v352_v8  ;;  %1138 = vmatprep.mubr.f32.mxu1 %v513_v11 }
 0x18c   :  { %v1277_v16 = vpop.eup %1276  ;;  %v457_v18 = vmul.f32 %v879_v7, %v347_v12  ;;  %v1075_v20 = vpop.f32.mrb[30].mxu0  ;;  %1139 = vmatmul.mubr.f32.gmra.mrb[20].mxu1 %v514_v10  ;;  %v516_v26 = vsub.f32 %v1637_v39, %v1275_v13 }
 0x18d   :  { %1286 = vtanh.f32 %v458_v14  ;;  %v362_v22 = vadd.f32 %v1075_v20, %v1549_v21  ;;  %v356_v24 = vpop.f32.mrb[31].mxu0  ;;  %v515_v25 = vsub.f32 %v1639_v42, %v1277_v16 }
 0x18e   :  { %1288 = vtanh.f32 %v457_v18  ;;  %v357_v27 = vadd.f32 %v356_v24, %v1549_v21 }
 0x18f   :  { %v1279_v28 = vpop.eup %1278  ;;  %v460_v29 = vmul.f32 %v884_v15, %v362_v22  ;;  %1141 = vmatprep.mubr.f32.mxu1 %v515_v25 }
 0x190   :  { %v1281_v30 = vpop.eup %1280  ;;  %v459_v31 = vmul.f32 %v883_v23, %v357_v27  ;;  %1142 = vmatmul.mubr.f32.gmra.mrb[22].mxu1 %v516_v26  ;;  %v518_v33 = vsub.f32 %v454_v52, %v1279_v28 }
 0x191   :  { %1290 = vtanh.f32 %v460_v29  ;;  %v517_v32 = vsub.f32 %v453_v55, %v1281_v30 }
 0x192   :  { %1292 = vtanh.f32 %v459_v31 }
 0x193   :  { %v1283_v34 = vpop.eup %1282  ;;  %1144 = vmatprep.mubr.f32.mxu1 %v517_v32 }
 0x194   :  { %v1285_v36 = vpop.eup %1284  ;;  %1145 = vmatmul.mubr.f32.gmra.mrb[24].mxu1 %v518_v33  ;;  %v520_v37 = vsub.f32 %v456_v1, %v1283_v34 }
 0x195   :  { %v519_v35 = vsub.f32 %v455_v4, %v1285_v36 }
 0x197   :  { %v1287_v38 = vpop.eup %1286  ;;  %1147 = vmatprep.mubr.f32.mxu1 %v519_v35 }
 0x198   :  { %v1289_v21 = vpop.eup %1288  ;;  %1148 = vmatmul.mubr.f32.gmra.mrb[26].mxu1 %v520_v37  ;;  %v522_v40 = vsub.f32 %v458_v14, %v1287_v38 }
 0x199   :  { %v521_v39 = vsub.f32 %v457_v18, %v1289_v21 }
 0x19b   :  { %v1291_v41 = vpop.eup %1290  ;;  %1150 = vmatprep.mubr.f32.mxu1 %v521_v39 }
 0x19c   :  { %v1293_v42 = vpop.eup %1292  ;;  %1151 = vmatmul.mubr.f32.gmra.mrb[28].mxu1 %v522_v40  ;;  %v524_v44 = vsub.f32 %v460_v29, %v1291_v41 }
 0x19d   :  { %v523_v43 = vsub.f32 %v459_v31, %v1293_v42 }
 0x19f   :  { %1153 = vmatprep.mubr.f32.mxu1 %v523_v43 }
 0x1a0   :  { %1154 = vmatmul.mubr.f32.gmra.mrb[30].mxu1 %v524_v44 }
 0x237   :  { %v1110_v47 = vpop.f32.mrb[0].mxu1 }
 0x238   :  { %v617_v49 = vadd.f32 %v1110_v47, %v1661_v46  ;;  %v611_v48 = vpop.f32.mrb[1].mxu1 }
 0x239   :  { %v612_v50 = vadd.f32 %v611_v48, %v1661_v46 }
 0x23a   :  { %771 = vst [vmem:[#allocation11 + $0x8] sm:$0xff] %v617_v49 }
 0x23b   :  { %770 = vst [vmem:[#allocation11] sm:$0xff] %v612_v50  ;;  %v1113_v51 = vpop.f32.mrb[2].mxu1 }
 0x23c   :  { %v627_v52 = vadd.f32 %v1113_v51, %v1661_v46  ;;  %v621_v53 = vpop.f32.mrb[3].mxu1 }
 0x23d   :  { %v622_v54 = vadd.f32 %v621_v53, %v1661_v46 }
 0x23e   :  { %773 = vst [vmem:[#allocation11 + $0x18] sm:$0xff] %v627_v52 }
 0x23f   :  { %772 = vst [vmem:[#allocation11 + $0x10] sm:$0xff] %v622_v54  ;;  %v1116_v17 = vpop.f32.mrb[4].mxu1 }
 0x240   :  { %v637_v19 = vadd.f32 %v1116_v17, %v1661_v46  ;;  %v631_v55 = vpop.f32.mrb[5].mxu1 }
 0x241   :  { %v632_v56 = vadd.f32 %v631_v55, %v1661_v46 }
 0x242   :  { %775 = vst [vmem:[#allocation11 + $0x28] sm:$0xff] %v637_v19 }
 0x243   :  { %774 = vst [vmem:[#allocation11 + $0x20] sm:$0xff] %v632_v56  ;;  %v1119_v58 = vpop.f32.mrb[6].mxu1 }
 0x244   :  { %v647_v57 = vadd.f32 %v1119_v58, %v1661_v46  ;;  %v641_v59 = vpop.f32.mrb[7].mxu1 }
 0x245   :  { %v642_v60 = vadd.f32 %v641_v59, %v1661_v46 }
 0x246   :  { %777 = vst [vmem:[#allocation11 + $0x38] sm:$0xff] %v647_v57 }
 0x247   :  { %776 = vst [vmem:[#allocation11 + $0x30] sm:$0xff] %v642_v60  ;;  %v1122_v62 = vpop.f32.mrb[8].mxu1 }
 0x248   :  { %v657_v63 = vadd.f32 %v1122_v62, %v1661_v46  ;;  %v651_v61 = vpop.f32.mrb[9].mxu1 }
 0x249   :  { %v652_v0 = vadd.f32 %v651_v61, %v1661_v46 }
 0x24a   :  { %779 = vst [vmem:[#allocation11 + $0x48] sm:$0xff] %v657_v63 }
 0x24b   :  { %778 = vst [vmem:[#allocation11 + $0x40] sm:$0xff] %v652_v0  ;;  %v1125_v1 = vpop.f32.mrb[10].mxu1 }
 0x24c   :  { %v667_v2 = vadd.f32 %v1125_v1, %v1661_v46  ;;  %v661_v3 = vpop.f32.mrb[11].mxu1 }
 0x24d   :  { %v662_v4 = vadd.f32 %v661_v3, %v1661_v46 }
 0x24e   :  { %781 = vst [vmem:[#allocation11 + $0x58] sm:$0xff] %v667_v2 }
 0x24f   :  { %780 = vst [vmem:[#allocation11 + $0x50] sm:$0xff] %v662_v4  ;;  %v1128_v5 = vpop.f32.mrb[12].mxu1 }
 0x250   :  { %v677_v7 = vadd.f32 %v1128_v5, %v1661_v46  ;;  %v671_v6 = vpop.f32.mrb[13].mxu1 }
 0x251   :  { %v672_v8 = vadd.f32 %v671_v6, %v1661_v46 }
 0x252   :  { %783 = vst [vmem:[#allocation11 + $0x68] sm:$0xff] %v677_v7 }
 0x253   :  { %782 = vst [vmem:[#allocation11 + $0x60] sm:$0xff] %v672_v8  ;;  %v1131_v9 = vpop.f32.mrb[14].mxu1 }
 0x254   :  { %v687_v11 = vadd.f32 %v1131_v9, %v1661_v46  ;;  %v681_v12 = vpop.f32.mrb[15].mxu1 }
 0x255   :  { %v682_v10 = vadd.f32 %v681_v12, %v1661_v46 }
 0x256   :  { %785 = vst [vmem:[#allocation11 + $0x78] sm:$0xff] %v687_v11 }
 0x257   :  { %784 = vst [vmem:[#allocation11 + $0x70] sm:$0xff] %v682_v10  ;;  %v1134_v13 = vpop.f32.mrb[16].mxu1 }
 0x258   :  { %v697_v14 = vadd.f32 %v1134_v13, %v1661_v46  ;;  %v691_v15 = vpop.f32.mrb[17].mxu1 }
 0x259   :  { %v692_v16 = vadd.f32 %v691_v15, %v1661_v46 }
 0x25a   :  { %787 = vst [vmem:[#allocation11 + $0x88] sm:$0xff] %v697_v14 }
 0x25b   :  { %786 = vst [vmem:[#allocation11 + $0x80] sm:$0xff] %v692_v16  ;;  %v1137_v18 = vpop.f32.mrb[18].mxu1 }
 0x25c   :  { %v707_v20 = vadd.f32 %v1137_v18, %v1661_v46  ;;  %v701_v23 = vpop.f32.mrb[19].mxu1 }
 0x25d   :  { %v702_v22 = vadd.f32 %v701_v23, %v1661_v46 }
 0x25e   :  { %789 = vst [vmem:[#allocation11 + $0x98] sm:$0xff] %v707_v20 }
 0x25f   :  { %788 = vst [vmem:[#allocation11 + $0x90] sm:$0xff] %v702_v22  ;;  %v1140_v24 = vpop.f32.mrb[20].mxu1 }
 0x260   :  { %v717_v25 = vadd.f32 %v1140_v24, %v1661_v46  ;;  %v711_v27 = vpop.f32.mrb[21].mxu1 }
 0x261   :  { %v712_v26 = vadd.f32 %v711_v27, %v1661_v46 }
 0x262   :  { %791 = vst [vmem:[#allocation11 + $0xa8] sm:$0xff] %v717_v25 }
 0x263   :  { %790 = vst [vmem:[#allocation11 + $0xa0] sm:$0xff] %v712_v26  ;;  %v1143_v28 = vpop.f32.mrb[22].mxu1 }
 0x264   :  { %v727_v29 = vadd.f32 %v1143_v28, %v1661_v46  ;;  %v721_v30 = vpop.f32.mrb[23].mxu1 }
 0x265   :  { %v722_v31 = vadd.f32 %v721_v30, %v1661_v46 }
 0x266   :  { %793 = vst [vmem:[#allocation11 + $0xb8] sm:$0xff] %v727_v29 }
 0x267   :  { %792 = vst [vmem:[#allocation11 + $0xb0] sm:$0xff] %v722_v31  ;;  %v1146_v32 = vpop.f32.mrb[24].mxu1 }
 0x268   :  { %v737_v33 = vadd.f32 %v1146_v32, %v1661_v46  ;;  %v731_v34 = vpop.f32.mrb[25].mxu1 }
 0x269   :  { %v732_v36 = vadd.f32 %v731_v34, %v1661_v46 }
 0x26a   :  { %795 = vst [vmem:[#allocation11 + $0xc8] sm:$0xff] %v737_v33 }
 0x26b   :  { %794 = vst [vmem:[#allocation11 + $0xc0] sm:$0xff] %v732_v36  ;;  %v1149_v35 = vpop.f32.mrb[26].mxu1 }
 0x26c   :  { %v747_v37 = vadd.f32 %v1149_v35, %v1661_v46  ;;  %v741_v38 = vpop.f32.mrb[27].mxu1 }
 0x26d   :  { %v742_v21 = vadd.f32 %v741_v38, %v1661_v46 }
 0x26e   :  { %797 = vst [vmem:[#allocation11 + $0xd8] sm:$0xff] %v747_v37 }
 0x26f   :  { %796 = vst [vmem:[#allocation11 + $0xd0] sm:$0xff] %v742_v21  ;;  %v1152_v39 = vpop.f32.mrb[28].mxu1 }
 0x270   :  { %v757_v40 = vadd.f32 %v1152_v39, %v1661_v46  ;;  %v751_v41 = vpop.f32.mrb[29].mxu1 }
 0x271   :  { %v752_v42 = vadd.f32 %v751_v41, %v1661_v46 }
 0x272   :  { %799 = vst [vmem:[#allocation11 + $0xe8] sm:$0xff] %v757_v40 }
 0x273   :  { %798 = vst [vmem:[#allocation11 + $0xe0] sm:$0xff] %v752_v42  ;;  %v1155_v43 = vpop.f32.mrb[30].mxu1 }
 0x274   :  { %v767_v44 = vadd.f32 %v1155_v43, %v1661_v46  ;;  %v761_v45 = vpop.f32.mrb[31].mxu1 }
 0x275   :  { %v762_v47 = vadd.f32 %v761_v45, %v1661_v46 }
 0x276   :  { %801 = vst [vmem:[#allocation11 + $0xf8] sm:$0xff] %v767_v44 }
 0x277   :  { %800 = vst [vmem:[#allocation11 + $0xf0] sm:$0xff] %v762_v47 }
 0x278   :  { %1415 = shalt.err (!%p1412_p2)
}
 0x279   :  { %s1416_s7 = scalar_lea.hbm %s1715_s5, 4096 }
 0x27a   :  { %p1417_p3 = scmp.ne.s32.totalorder %s1715_s5, %s1416_s7  ;;  %p1420_p4 = scmp.lt.u32.totalorder %s1416_s7, %s1715_s5 }
 0x27c   :  { %p1422_p5 = pnand %p1420_p4, %p1417_p3 }
 0x27e   :  { %1425 = shalt.err (!%p1422_p5)
}
 0x27f   :  { %813 = dma.vmem_to_hbm [thread:$0]  %s808_s29, 4096, %s1715_s5, [#allocation4], %s1439_s18, %s1439_s18, %s1440_s19  }
 0x280   :  { %1432 = dma.done.wait [#allocation4], 4096  }
 0x281   :  { %1433 = vsyncadd [#allocation4], 4294963200 }
 0x282   :  { %817 = vsyncpa [#allocation3], 1 }
 0x283   :  { %818 = vsyncpa [#allocation6], 1 }
 0x284   :  { %819 = vsyncpa [#allocation9], 1 }
 0x285   :  { %820 = vsyncpa [#allocation4], 1 }

</bundles_post_ra>
